<compile_context>
chip_gen: v7x
topology: tpu7x:2x2x1
jax: 0.10.0
libtpu: 0.0.40
codegen_flags: <defaults>
</compile_context>

<pallas_src>
import functools
import math

import jax
import jax.numpy as jnp
from jax.experimental import pallas as pl
from jax.experimental.pallas import tpu as pltpu


# ----------------------------------------------------------------------------
# Parameter / buffer setup (glue, plain JAX) — mirrors init_pos_emb exactly.
# ----------------------------------------------------------------------------
def init_pos_emb(emb_size: int, maxlen: int = 5000) -> jax.Array:
    """Returns positional embedding of shape (maxlen, 1, emb_size)."""
    den = jnp.exp(
        -jnp.arange(0, emb_size, 2, dtype=jnp.float32) * math.log(10000.0) / emb_size
    )
    pos = jnp.arange(0, maxlen, dtype=jnp.float32).reshape(maxlen, 1)
    pe = jnp.zeros((maxlen, emb_size), dtype=jnp.float32)
    pe = pe.at[:, 0::2].set(jnp.sin(pos * den))
    pe = pe.at[:, 1::2].set(jnp.cos(pos * den))
    return pe[:, None, :]  # (maxlen, 1, emb_size)


# ----------------------------------------------------------------------------
# Pallas kernel: broadcast add + (optional) inverted dropout.
#   x_ref : (tile_s, B*E)   input dtype
#   pe_ref: (tile_s, E)     input dtype (pre-cast in the wrapper)
#   o_ref : (tile_s, B*E)
# ----------------------------------------------------------------------------
def pos_enc_kernel(seed_ref, x_ref, pe_ref, o_ref, *, dropout_p, training, batch):
    x = x_ref[...]                                   # (tile_s, B*E)
    pe = pe_ref[...]                                 # (tile_s, E)
    if batch > 1:
        # broadcast PE across the batch along the lane axis (VMEM-resident,
        # hides under the DMA of the mem-bound add).
        pe = jnp.concatenate([pe] * batch, axis=-1)  # (tile_s, B*E)
    y = x + pe

    if training and dropout_p > 0.0:
        tile_rows, ncols = y.shape
        # Per-element global counter: (global_row * ncols + col), hashed with
        # the seed via murmur3's fmix32 finalizer.  Pure jnp uint32 ops only.
        pid = pl.program_id(0).astype(jnp.uint32)
        row = jax.lax.broadcasted_iota(jnp.uint32, y.shape, 0)
        col = jax.lax.broadcasted_iota(jnp.uint32, y.shape, 1)
        idx = (row + pid * jnp.uint32(tile_rows)) * jnp.uint32(ncols) + col

        key = seed_ref[0].astype(jnp.uint32)
        h = idx ^ (key * jnp.uint32(0x9E3779B9))
        h = h ^ (h >> 16)
        h = h * jnp.uint32(0x85EBCA6B)
        h = h ^ (h >> 13)
        h = h * jnp.uint32(0xC2B2AE35)
        h = h ^ (h >> 16)

        # keep iff bits >= p * 2^32  (integer-domain compare, no float convert)
        thresh = jnp.uint32(min(int(round(dropout_p * (1 << 32))), (1 << 32) - 1))
        keep = h >= thresh
        scale = jnp.asarray(1.0 / (1.0 - dropout_p), dtype=y.dtype)
        y = jnp.where(keep, y * scale, jnp.zeros_like(y))

    o_ref[...] = y.astype(o_ref.dtype)


# ----------------------------------------------------------------------------
# Tile-size heuristic: largest multiple-of-8 divisor of S whose x-tile is
# ~<= 1 MiB.  Falls back to a single full-S block (always a legal block shape).
# ----------------------------------------------------------------------------
def _choose_tile_s(seq_len: int, row_bytes: int, target_bytes: int = 1 << 20) -> int:
    if seq_len <= 8:
        return seq_len
    max_rows = max(8, target_bytes // max(row_bytes, 1))
    best = None
    t = 8
    limit = min(seq_len, max_rows)
    while t <= limit:
        if seq_len % t == 0:
            best = t
        t += 8
    # Ragged S with no multiple-of-8 divisor in budget: fall back to one block.
    return best if best is not None else seq_len


# ----------------------------------------------------------------------------
# Wrapper (the "module forward")
# ----------------------------------------------------------------------------
def positional_encoding(
    token_emb: jax.Array,          # (S, B, E)
    pos_embedding: jax.Array,      # (maxlen, 1, E)
    *,
    dropout_p: float = 0.0,
    training: bool = False,
    seed: int = 0,
    tile_s: int | None = None,
) -> jax.Array:
    S, B, E = token_emb.shape
    dtype = token_emb.dtype

    # Glue (plain JAX): slice PE to seq_len, drop the broadcast dim, and cast
    # to the input dtype so the kernel DMAs half the PE bytes for bf16 inputs.
    pe2d = pos_embedding[:S, 0, :].astype(dtype)      # (S, E)
    # Lane-dense presentation: fold (B, E) into the last dim (free reshape).
    x2d = token_emb.reshape(S, B * E)                 # (S, B*E)

    row_bytes = B * E * jnp.dtype(dtype).itemsize
    if tile_s is None:
        tile_s = _choose_tile_s(S, row_bytes)
    tile_s = min(int(tile_s), S)
    if S % tile_s != 0 or (tile_s != S and tile_s % 8 != 0):
        tile_s = S
    grid = (S // tile_s,)

    seed_arr = jnp.asarray([seed], dtype=jnp.int32)
    kernel = functools.partial(
        pos_enc_kernel,
        dropout_p=float(dropout_p),
        training=bool(training),
        batch=int(B),
    )

    out2d = pl.pallas_call(
        kernel,
        out_shape=jax.ShapeDtypeStruct((S, B * E), dtype),
        grid=grid,
        in_specs=[
            pl.BlockSpec(memory_space=pltpu.MemorySpace.SMEM),       # seed scalar
            pl.BlockSpec((tile_s, B * E), lambda i: (i, 0)),         # x tile
            pl.BlockSpec((tile_s, E), lambda i: (i, 0)),             # pe tile
        ],
        out_specs=pl.BlockSpec((tile_s, B * E), lambda i: (i, 0)),
        compiler_params=pltpu.CompilerParams(
            dimension_semantics=("parallel",),   # lets v7x's 2 TCs split the grid
        ),
    )(seed_arr, x2d, pe2d)

    return out2d.reshape(S, B, E)


# ----------------------------------------------------------------------------
# Test
# ----------------------------------------------------------------------------
if __name__ == "__main__":
    SEQ, BATCH, EMB = 8, 2, 32
    MAXLEN = 5000
    DROPOUT_P = 0.1

    key = jax.random.PRNGKey(0)
    token_emb = jax.random.normal(key, (SEQ, BATCH, EMB), dtype=jnp.float32)

    pos_embedding = init_pos_emb(EMB, MAXLEN)  # buffer, deterministic

    # --- eval mode: dropout is identity -> exact reference check ---
    out_eval = positional_encoding(
        token_emb, pos_embedding, dropout_p=DROPOUT_P, training=False
    )
    out_eval = jax.block_until_ready(out_eval)

    ref = token_emb + pos_embedding[:SEQ]  # broadcast (S,1,E) over batch
    assert out_eval.shape == (SEQ, BATCH, EMB)
    assert jnp.allclose(out_eval, ref, atol=1e-6, rtol=1e-6), "eval-mode mismatch"

    # --- train mode: exercise in-kernel dropout path (stochastic) ---
    out_train = positional_encoding(
        token_emb, pos_embedding, dropout_p=DROPOUT_P, training=True, seed=123
    )
    out_train = jax.block_until_ready(out_train)
    # dropped elements are exactly 0, kept elements are ref / (1 - p)
    kept = out_train != 0.0
    assert jnp.allclose(
        jnp.where(kept, out_train, 0.0),
        jnp.where(kept, ref / (1.0 - DROPOUT_P), 0.0),
        atol=1e-5,
        rtol=1e-5,
    ), "train-mode dropout scaling mismatch"
    drop_frac = 1.0 - float(jnp.mean(kept.astype(jnp.float32)))
    assert 0.0 < drop_frac < 0.35, f"implausible drop fraction {drop_frac}"

    print("KERNEL_OK")
</pallas_src>

<mosaic_0001>
module attributes {stable_mosaic.version = 11 : i64} {
  func.func @pos_enc_kernel(%arg0: i32, %arg1: memref<1xi32, #tpu.memory_space<smem>>, %arg2: memref<8x64xf32, #tpu.memory_space<vmem>>, %arg3: memref<8x32xf32, #tpu.memory_space<vmem>>, %arg4: memref<8x64xf32, #tpu.memory_space<vmem>>) attributes {dimension_semantics = [#tpu.dimension_semantics<parallel>], iteration_bounds = array<i64: 1>, scalar_prefetch = 0 : i64, scratch_operands = 0 : i64, tpu.core_type = #tpu.core_type<tc>, window_params = [{transform_indices = @transform_0, window_bounds = array<i64: 1>}, {transform_indices = @transform_1, window_bounds = array<i64: 8, 64>}, {transform_indices = @transform_2, window_bounds = array<i64: 8, 32>}, {transform_indices = @transform_3, window_bounds = array<i64: 8, 64>}]} {
    %c0 = arith.constant 0 : index
    %c0_0 = arith.constant 0 : index
    %0 = vector.load %arg2[%c0, %c0_0] : memref<8x64xf32, #tpu.memory_space<vmem>>, vector<8x64xf32>
    %c0_1 = arith.constant 0 : index
    %c0_2 = arith.constant 0 : index
    %1 = vector.load %arg3[%c0_1, %c0_2] : memref<8x32xf32, #tpu.memory_space<vmem>>, vector<8x32xf32>
    %2 = tpu.concatenate %1, %1 in 1 : vector<8x32xf32>, vector<8x32xf32> -> vector<8x64xf32>
    %3 = arith.addf %0, %2 : vector<8x64xf32>
    %c0_3 = arith.constant 0 : index
    %c0_4 = arith.constant 0 : index
    %4 = vector.load %arg4[%c0_3, %c0_4] : memref<8x64xf32, #tpu.memory_space<vmem>>, vector<8x64xf32>
    tpu.vector_store %arg4[%c0_3, %c0_4], %3 {strides = array<i32>} : memref<8x64xf32, #tpu.memory_space<vmem>>, vector<8x64xf32>,
    return
  }
  func.func @transform_0(%arg0: i32) -> i32 {
    %c0_i32 = arith.constant 0 : i32
    %c0_i32_0 = arith.constant 0 : i32
    return %c0_i32 : i32
  }
  func.func @transform_1(%arg0: i32) -> (i32, i32) {
    %c0_i32 = arith.constant 0 : i32
    %c0_i32_0 = arith.constant 0 : i32
    return %arg0, %c0_i32 : i32, i32
  }
  func.func @transform_2(%arg0: i32) -> (i32, i32) {
    %c0_i32 = arith.constant 0 : i32
    %c0_i32_0 = arith.constant 0 : i32
    return %arg0, %c0_i32 : i32, i32
  }
  func.func @transform_3(%arg0: i32) -> (i32, i32) {
    %c0_i32 = arith.constant 0 : i32
    %c0_i32_0 = arith.constant 0 : i32
    return %arg0, %c0_i32 : i32, i32
  }
}

</mosaic_0001>

<bundles_post_ra>
// kernel: tpu_custom_call.1
= control target key start
LH: loop header
LB: loop body
LE: loop exit
PB: predicated region body
PF: predicated region fallthrough
CT: control target
= control target key end

     0   :  { %9 = vsyncpa [#allocation4], 0  ;;  %s203_s0 = inlined_call_operand.<no memory space> [shape: s32[1], index: 0, kind: input, shape index: {}]   ;;  %s204_s1 = inlined_call_operand.hbm [shape: f32[8,64], index: 1, kind: input, shape index: {}]   ;;  %s205_s2 = inlined_call_operand.hbm [shape: f32[8,32], index: 2, kind: input, shape index: {}]   ;;  %s206_s3 = inlined_call_operand.hbm [shape: f32[8,64], index: 3, kind: output, shape index: {}]  }
   0x1   :  { %10 = vsyncpa [#allocation7], 0 }
   0x2   :  { %11 = vsyncpa [#allocation5], 0  ;;  %s143_s12 = smov [#allocation3]   ;;  %s144_s14 = smov [#allocation6]  }
   0x3   :  { %s20_s13 = sshll.u32 %s143_s12, 4  ;;  %s30_s15 = sshll.u32 %s144_s14, 4  ;;  %s21_s13 = int_to_ptr.vmem [resolvable:$true] %s20_s13  ;;  %s31_s15 = int_to_ptr.vmem [resolvable:$true] %s30_s15 }
   0x4   :  { %s71_s17 = scalar_lea.hbm %s204_s1, 128 }
   0x5   :  { %p72_p0 = scmp.ne.s32.totalorder %s204_s1, %s71_s17  ;;  %p75_p1 = scmp.lt.u32.totalorder %s71_s17, %s204_s1 }
   0x7   :  { %p77_p2 = pnand %p75_p1, %p72_p0 }
   0x9   :  { %80 = shalt.err (!%p77_p2)
}
   0xa   :  { %s81_s22 = scalar_lea.vmem %s21_s13, 128  ;;  %p86_p4 = scmp.lt.s32.totalorder %s21_s13, %s21_s13 }
   0xb   :  { %p82_p3 = scmp.ne.s32.totalorder %s21_s13, %s81_s22  ;;  %p87_p5 = scmp.lt.s32.totalorder %s81_s22, %s81_s22 }
   0xd   :  { %p88_p6 = por %p87_p5, %p86_p4 }
   0xf   :  { %p89_p7 = pnand %p88_p6, %p82_p3 }
  0x11   :  { %92 = shalt.err (!%p89_p7)
}
  0x12   :  { %23 = dma.hbm_to_vmem [thread:$0]  %s204_s1, 128, %s21_s13, [#allocation4]  }
  0x13   :  { %s93_s27 = scalar_lea.hbm %s205_s2, 128 }
  0x14   :  { %p94_p8 = scmp.ne.s32.totalorder %s205_s2, %s93_s27  ;;  %p97_p9 = scmp.lt.u32.totalorder %s93_s27, %s205_s2 }
  0x16   :  { %p99_p10 = pnand %p97_p9, %p94_p8 }
  0x18   :  { %102 = shalt.err (!%p99_p10)
}
  0x19   :  { %s103_s5 = scalar_lea.vmem %s31_s15, 128  ;;  %p108_p12 = scmp.lt.s32.totalorder %s31_s15, %s31_s15 }
  0x1a   :  { %p104_p11 = scmp.ne.s32.totalorder %s31_s15, %s103_s5  ;;  %p109_p13 = scmp.lt.s32.totalorder %s103_s5, %s103_s5 }
  0x1c   :  { %p110_p0 = por %p109_p13, %p108_p12 }
  0x1e   :  { %p111_p1 = pnand %p110_p0, %p104_p11 }
  0x20   :  { %114 = shalt.err (!%p111_p1)
}
  0x21   :  { %33 = dma.hbm_to_vmem [thread:$0]  %s205_s2, 128, %s31_s15, [#allocation7]  }
  0x22   :  { %137 = dma.done.wait [#allocation4], 128  }
  0x23   :  { %138 = vsyncadd [#allocation4], 4294967168 }
  0x24   :  { %139 = dma.done.wait [#allocation7], 128  }
  0x25   :  { %140 = vsyncadd [#allocation7], 4294967168  ;;  %v41_v0 = vld [vmem:[#allocation6] sm:$0xff]  ;;  %s145_s7 = smov 32   ;;  %vm46_vm0 = vcmask 261120   ;;  %v40_v1 = vld [vmem:[#allocation3] sm:$0xff] }
  0x26   :  { %43 = vrot.lane.b32.xlu0 %v41_v0, %s145_s7  ;;  %s146_s8 = smov [#allocation8]   ;;  %vm49_vm1 = vcmask 523264  }
  0x27   :  { %s57_s9 = sshll.u32 %s146_s8, 4  ;;  %s58_s9 = int_to_ptr.vmem [resolvable:$true] %s57_s9 }
  0x28   :  { %s115_s10 = scalar_lea.vmem %s58_s9, 128  ;;  %p120_p3 = scmp.lt.s32.totalorder %s58_s9, %s58_s9 }
  0x29   :  { %p116_p2 = scmp.ne.s32.totalorder %s58_s9, %s115_s10  ;;  %p121_p4 = scmp.lt.s32.totalorder %s115_s10, %s115_s10 }
  0x2b   :  { %p122_p5 = por %p121_p4, %p120_p3 }
  0x2d   :  { %p123_p6 = pnand %p122_p5, %p116_p2 }
  0x98   :  { %v44_v2 = vpop.permute.xlu0 %43 }
  0x99   :  { %v47_v3 = vsel %vm46_vm0, %v41_v0, %v44_v2 }
  0x9a   :  { %v48_v4 = vadd.f32 %v47_v3, %v40_v1 }
  0x9c   :  { %50 = vst.msk [vmem:[#allocation8] sm:$0xff] %vm49_vm1, %v48_v4 }
  0x9d   :  { %126 = shalt.err (!%p123_p6)
}
  0x9e   :  { %s127_s12 = scalar_lea.hbm %s206_s3, 128 }
  0x9f   :  { %p128_p7 = scmp.ne.s32.totalorder %s206_s3, %s127_s12  ;;  %p131_p8 = scmp.lt.u32.totalorder %s127_s12, %s206_s3 }
  0xa1   :  { %p133_p9 = pnand %p131_p8, %p128_p7 }
  0xa3   :  { %136 = shalt.err (!%p133_p9)
}
  0xa4   :  { %60 = dma.vmem_to_hbm [thread:$0]  %s58_s9, 128, %s206_s3, [#allocation5]  }
  0xa5   :  { %141 = dma.done.wait [#allocation5], 128  }
  0xa6   :  { %142 = vsyncadd [#allocation5], 4294967168 }
  0xa7   :  { %64 = vsyncpa [#allocation4], 1 }
  0xa8   :  { %65 = vsyncpa [#allocation7], 1 }
  0xa9   :  { %66 = vsyncpa [#allocation5], 1 }

</bundles_post_ra>
